<compile_context>
chip_gen: v5e
topology: v5e:2x2
jax: 0.10.0
libtpu: 0.0.40
codegen_flags: <defaults>
</compile_context>

<pallas_src>
import jax
import jax.numpy as jnp
from jax.experimental import pallas as pl
from jax.experimental.pallas import tpu as pltpu


def _make_identity_dma_kernel(chunk, n_main, tail):
    """Builds an HBM->HBM chunked copy kernel.

    The leading axis of the (shared-shape) input/output HBM refs is split into
    `n_main` chunks of `chunk` rows plus an optional trailing chunk of `tail`
    rows.  All three are static Python ints; grid step i copies chunk i.
    """

    def kernel(x_hbm, o_hbm, sem):
        i = pl.program_id(0)

        if tail == 0:
            # Every grid step copies one equally-sized, contiguous chunk.
            start = i * chunk
            cp = pltpu.make_async_copy(
                x_hbm.at[pl.ds(start, chunk)],
                o_hbm.at[pl.ds(start, chunk)],
                sem,
            )
            cp.start()
            cp.wait()
        else:
            @pl.when(i < n_main)
            def _():
                start = i * chunk
                cp = pltpu.make_async_copy(
                    x_hbm.at[pl.ds(start, chunk)],
                    o_hbm.at[pl.ds(start, chunk)],
                    sem,
                )
                cp.start()
                cp.wait()

            @pl.when(i == n_main)
            def _():
                start = n_main * chunk
                cp = pltpu.make_async_copy(
                    x_hbm.at[pl.ds(start, tail)],
                    o_hbm.at[pl.ds(start, tail)],
                    sem,
                )
                cp.start()
                cp.wait()

    return kernel


def identity_pallas(x, *, max_chunks=8):
    """Pallas implementation of nn.Identity().forward(x): returns a copy of x.

    The tensor is viewed as a lane-dense 2-D (rows, cols) slab when its size
    is a multiple of 128 (widest cols <= 8192 that still leaves >= 8 rows),
    otherwise as a flat 1-D array.  The copy is performed as a handful of
    direct HBM->HBM DMAs — no VMEM staging at all.
    """
    orig_shape = x.shape
    dtype = x.dtype
    total = x.size

    if total == 0:
        # Nothing to copy; reshape is metadata-only.
        return x

    # --- Lane-dense 2-D factorization when possible. -------------------------
    cols = None
    for c in (8192, 4096, 2048, 1024, 512, 256, 128):
        if total % c == 0 and total // c >= 8:
            cols = c
            break
    if cols is None and total % 128 == 0:
        cols = 128

    if cols is not None:
        view_shape = (total // cols, cols)
    else:
        # Odd element count: flat 1-D HBM->HBM DMA.  No VMEM is involved, so
        # neither the (8,128) tiling rule nor the scoped-VMEM limit applies.
        view_shape = (total,)

    x_view = x.reshape(view_shape)
    n_lead = view_shape[0]

    # --- Split the leading axis into a few chunks (>= 2 whenever possible) so
    #     both TensorCores participate on v7x; per-step cost is ~0.35 us. -----
    if cols is None:
        num_chunks = 1  # rare odd-size fallback: one aligned whole-array DMA
    else:
        num_chunks = max(1, min(max_chunks, n_lead))
    chunk = (n_lead + num_chunks - 1) // num_chunks  # ceil-div (static)
    n_main = n_lead // chunk
    tail = n_lead - n_main * chunk
    grid = (n_main + (1 if tail else 0),)

    nbytes = total * x.dtype.itemsize

    out = pl.pallas_call(
        _make_identity_dma_kernel(chunk, n_main, tail),
        out_shape=jax.ShapeDtypeStruct(view_shape, dtype),
        grid_spec=pltpu.PrefetchScalarGridSpec(
            num_scalar_prefetch=0,
            grid=grid,
            # Both operands stay in HBM; the kernel moves data with explicit
            # DMAs — no automatic HBM<->VMEM pipelining is generated.
            in_specs=[pl.BlockSpec(memory_space=pl.ANY)],
            out_specs=pl.BlockSpec(memory_space=pl.ANY),
            scratch_shapes=[pltpu.SemaphoreType.DMA(())],
        ),
        compiler_params=pltpu.CompilerParams(
            dimension_semantics=("parallel",),
        ),
        cost_estimate=pl.CostEstimate(
            flops=0, transcendentals=0, bytes_accessed=2 * nbytes
        ),
    )(x_view)

    return out.reshape(orig_shape)


if __name__ == "__main__":
    key = jax.random.PRNGKey(0)

    # Small shape consistent with the module's typical use: N=2, C=4, H=W=16.
    N, C, H, W = 2, 4, 16, 16
    x = jax.random.normal(key, (N, C, H, W), dtype=jnp.float32)

    out = identity_pallas(x)
    out = jax.block_until_ready(out)

    # Identity: output must equal input exactly.
    assert out.shape == x.shape
    assert out.dtype == x.dtype
    assert jnp.array_equal(out, x)

    # Also exercise the odd-size (non multiple of 128) fallback path.
    x_odd = jax.random.normal(key, (3, 5, 7), dtype=jnp.float32)  # 105 elems
    out_odd = jax.block_until_ready(identity_pallas(x_odd))
    assert jnp.array_equal(out_odd, x_odd)

    print("KERNEL_OK")
</pallas_src>

<mosaic_0001>
module attributes {stable_mosaic.version = 11 : i64} {
  func.func @kernel(%arg0: i32, %arg1: memref<8x256xf32, #tpu.memory_space<any>>, %arg2: memref<8x256xf32, #tpu.memory_space<any>>, %arg3: memref<!tpu.dma_semaphore, #tpu.memory_space<semaphore_mem>>) attributes {dimension_semantics = [#tpu.dimension_semantics<parallel>], iteration_bounds = array<i64: 8>, scalar_prefetch = 0 : i64, scratch_operands = 1 : i64, tpu.core_type = #tpu.core_type<tc>, window_params = [{}, {}]} {
    %c1_i32 = arith.constant 1 : i32
    %0 = arith.muli %arg0, %c1_i32 : i32
    %c0_i32 = arith.constant 0 : i32
    %1 = tpu.memref_slice %arg1[%0, %c0_i32] : memref<8x256xf32, #tpu.memory_space<any>> -> memref<1x256xf32, #tpu.memory_space<any>>
    %c0_i32_0 = arith.constant 0 : i32
    %2 = tpu.memref_slice %arg2[%0, %c0_i32_0] : memref<8x256xf32, #tpu.memory_space<any>> -> memref<1x256xf32, #tpu.memory_space<any>>
    tpu.enqueue_dma source(%1 : memref<1x256xf32, #tpu.memory_space<any>>) target(%2 : memref<1x256xf32, #tpu.memory_space<any>>) target_semaphore(%arg3 : memref<!tpu.dma_semaphore, #tpu.memory_space<semaphore_mem>>)
    %c0_i32_1 = arith.constant 0 : i32
    %3 = tpu.memref_slice %arg1[%0, %c0_i32_1] : memref<8x256xf32, #tpu.memory_space<any>> -> memref<1x256xf32, #tpu.memory_space<any>>
    %c0_i32_2 = arith.constant 0 : i32
    %4 = tpu.memref_slice %arg2[%0, %c0_i32_2] : memref<8x256xf32, #tpu.memory_space<any>> -> memref<1x256xf32, #tpu.memory_space<any>>
    tpu.wait_dma2 semaphore(%arg3 : memref<!tpu.dma_semaphore, #tpu.memory_space<semaphore_mem>>) src(%3 : memref<1x256xf32, #tpu.memory_space<any>>) dst(%4 : memref<1x256xf32, #tpu.memory_space<any>>)
    return
  }
}

</mosaic_0001>

<bundles_post_ra>
// kernel: tpu_custom_call.1
= control target key start
LH: loop header
LB: loop body
LE: loop exit
PB: predicated region body
PF: predicated region fallthrough
CT: control target
= control target key end

     0   :  { %s78_s6 = smov 0   ;;  %s103_s0 = inlined_call_operand.hbm [shape: f32[8,256], index: 0, kind: input, shape index: {}]   ;;  %s104_s1 = inlined_call_operand.hbm [shape: f32[8,256], index: 1, kind: output, shape index: {}]  }
   0x1 LB: > { %s13_s7 = sshrl.u32 %s80_s6, 3  ;;  %s14_s8 = sand.u32 7, %s80_s6   ;;  %s80_s6 = sphi %s78_s6, %s11_s6  }
   0x2   : > { %s57_s9 = sshll.u32 %s13_s7, 4  ;;  %s82_s11 = smov 128  }
   0x3   : > { %s16_s10 = sadd.s32 %s57_s9, %s14_s8  ;;  %30 = sst [smem:[#allocation4]] %s82_s11 }
   0x4   : > { %s17_s14 = scalar_lea.hbm %s103_s0, %s16_s10  ;;  %s18_s17 = scalar_lea.hbm %s104_s1, %s16_s10 }
   0x5   : > { %s23_s18 = sshll.u32 %s17_s14, 4  ;;  %s25_s19 = sshll.u32 %s18_s17, 4  ;;  %s24_s18 = int_to_ptr.hbm [resolvable:$true] %s23_s18  ;;  %s26_s19 = int_to_ptr.hbm [resolvable:$true] %s25_s19 }
   0x6   : > { %32 = sst [smem:[#allocation4 + $0x1]] %s82_s11  ;;  %s83_s20 = smov 1  }
   0x7   : > { %34 = sst [smem:[#allocation4 + $0x2]] %s83_s20  ;;  %s84_s21 = smov [#allocation2]  }
   0x8   : > { %s85_s22 = smov [#allocation3]   ;;  %s86_s23 = smov 0  }
   0x9   : > { %36 = dma.general %s24_s18, 32, %s26_s19, %s84_s21, %s85_s22, [#allocation4], %s86_s23, 0  }
   0xa   : > { %76 = dma.done.wait [#allocation2], 32 }
   0xb   : > { %77 = vsyncadd [#allocation2], 4294967264  ;;  %s11_s6 = sadd.s32 1, %s80_s6  }
   0xc   : > { %p8_p0 = scmp.ge.s32.totalorder %s11_s6, 8  }
   0xe   :  { %10 = sbr.rel (!%p8_p0) target bundleno = 1 (0x1), region = 23 }
  0x13   :  { %40 = vsyncmov [#allocation2] }
  0x16   :  { %s41_s24 = vpop.sfrf %40 }
  0x17   :  { %p58_p1 = scmp.ne.s32.totalorder %s41_s24, 0 }
  0x19   :  { %45 = shalt.err (%p58_p1)  }

</bundles_post_ra>
